<compile_context>
chip_gen: v7x
topology: tpu7x:2x2x1
jax: 0.10.0
libtpu: 0.0.40
codegen_flags: <defaults>
</compile_context>

<pallas_src>
import jax
import jax.numpy as jnp
from jax.experimental import pallas as pl
from jax.experimental.pallas import tpu as pltpu


def mock_bert_kernel(ids_ref, emb_ref, wt_ref, b_ref, seq_ref, pooled_ref):
    """Single-invocation kernel (all operands fit comfortably in VMEM).

    ids_ref    : SMEM (B*S,)  int32  flattened token ids (addressing data)
    emb_ref    : VMEM (V, H)  f32    embedding table
    wt_ref     : VMEM (H, H)  f32    pooler weight, pre-transposed (W.T)
    b_ref      : VMEM (1, H)  f32    pooler bias
    seq_ref    : VMEM (B*S, H) f32   sublane-dense last_hidden_state (wrapper reshapes)
    pooled_ref : VMEM (B, H)  f32    pooler output
    """
    B, H = pooled_ref.shape
    BS = seq_ref.shape[0]
    S = BS // B

    # Direct row gather: for each flat token index i, read its id from SMEM
    # and copy the matching embedding row into sublane i of the output.
    # Destination index is static; only the table row index is dynamic, so
    # each store is a pure dynamic-sublane move (no lane rotate, no mask).
    # Keep the s == 0 rows as live values so the pooler matmul does not have
    # to read the output ref back (would serialize it behind all stores).
    first_rows = []
    for i in range(BS):  # tiny static trip count (B*S = 16) at mock sizes
        tok = ids_ref[i]                              # scalar from SMEM
        row = emb_ref[pl.ds(tok, 1), :]               # (1, H) dynamic-sublane read
        seq_ref[pl.ds(i, 1), :] = row
        if i % S == 0:
            first_rows.append(row)

    # Pooler: Linear on the first token of each sequence, fed directly from
    # the already-loaded embedding rows (no VMEM store->load RAW on seq_ref).
    x0 = jnp.concatenate(first_rows, axis=0)          # (B, H)
    pooled_ref[...] = (
        jnp.dot(x0, wt_ref[...], preferred_element_type=jnp.float32)
        + b_ref[...]
    )


def mock_bert_forward(input_ids, emb_table, pooler_w, pooler_b):
    B, S = input_ids.shape
    V, H = emb_table.shape

    ids_flat = input_ids.reshape(B * S).astype(jnp.int32)  # -> SMEM
    wt = pooler_w.T                                        # (H, H): kernel computes x @ wt == x @ W.T
    bias = pooler_b.reshape(1, H)

    vmem = pl.BlockSpec(memory_space=pltpu.MemorySpace.VMEM)
    smem = pl.BlockSpec(memory_space=pltpu.MemorySpace.SMEM)

    seq_flat, pooled = pl.pallas_call(
        mock_bert_kernel,
        out_shape=(
            jax.ShapeDtypeStruct((B * S, H), jnp.float32),  # sublane-dense gather target
            jax.ShapeDtypeStruct((B, H), jnp.float32),
        ),
        in_specs=[smem, vmem, vmem, vmem],
        out_specs=(vmem, vmem),
    )(ids_flat, emb_table, wt, bias)

    return seq_flat.reshape(B, S, H), pooled


if __name__ == "__main__":
    # config: vocab_size=64, hidden_size=32 ; batch=2, seq=8
    V, H = 64, 32
    B, S = 2, 8

    key = jax.random.PRNGKey(0)
    k_ids, k_emb, k_w, k_b = jax.random.split(key, 4)

    input_ids = jax.random.randint(k_ids, (B, S), 0, V, dtype=jnp.int32)
    emb_table = jax.random.normal(k_emb, (V, H), dtype=jnp.float32) * 0.02
    pooler_w = jax.random.normal(k_w, (H, H), dtype=jnp.float32) * 0.02
    pooler_b = jax.random.normal(k_b, (H,), dtype=jnp.float32) * 0.02

    seq, pooled = mock_bert_forward(input_ids, emb_table, pooler_w, pooler_b)
    jax.block_until_ready((seq, pooled))

    # Reference check against plain JAX.
    seq_ref = emb_table[input_ids]                        # (B, S, H)
    pooled_ref = seq_ref[:, 0] @ pooler_w.T + pooler_b    # (B, H)
    assert jnp.allclose(seq, seq_ref, atol=1e-5), "last_hidden_state mismatch"
    assert jnp.allclose(pooled, pooled_ref, atol=1e-5), "pooler_output mismatch"

    print("KERNEL_OK")
</pallas_src>

<mosaic_0001>
module attributes {stable_mosaic.version = 11 : i64} {
  func.func @mock_bert_kernel(%arg0: memref<16xi32, #tpu.memory_space<smem>>, %arg1: memref<64x32xf32, #tpu.memory_space<vmem>>, %arg2: memref<32x32xf32, #tpu.memory_space<vmem>>, %arg3: memref<1x32xf32, #tpu.memory_space<vmem>>, %arg4: memref<16x32xf32, #tpu.memory_space<vmem>>, %arg5: memref<2x32xf32, #tpu.memory_space<vmem>>) attributes {dimension_semantics = [], scalar_prefetch = 0 : i64, scratch_operands = 0 : i64, tpu.core_type = #tpu.core_type<tc>} {
    %c0 = arith.constant 0 : index
    %0 = memref.load %arg0[%c0] : memref<16xi32, #tpu.memory_space<smem>>
    %1 = arith.index_cast %0 : i32 to index
    %c0_0 = arith.constant 0 : index
    %2 = vector.load %arg1[%1, %c0_0] : memref<64x32xf32, #tpu.memory_space<vmem>>, vector<1x32xf32>
    %c0_1 = arith.constant 0 : index
    %c0_2 = arith.constant 0 : index
    %3 = vector.load %arg4[%c0_1, %c0_2] : memref<16x32xf32, #tpu.memory_space<vmem>>, vector<1x32xf32>
    tpu.vector_store %arg4[%c0_1, %c0_2], %2 {strides = array<i32>} : memref<16x32xf32, #tpu.memory_space<vmem>>, vector<1x32xf32>,
    %c1 = arith.constant 1 : index
    %4 = memref.load %arg0[%c1] : memref<16xi32, #tpu.memory_space<smem>>
    %5 = arith.index_cast %4 : i32 to index
    %c0_3 = arith.constant 0 : index
    %6 = vector.load %arg1[%5, %c0_3] : memref<64x32xf32, #tpu.memory_space<vmem>>, vector<1x32xf32>
    %c1_4 = arith.constant 1 : index
    %c0_5 = arith.constant 0 : index
    %7 = vector.load %arg4[%c1_4, %c0_5] : memref<16x32xf32, #tpu.memory_space<vmem>>, vector<1x32xf32>
    tpu.vector_store %arg4[%c1_4, %c0_5], %6 {strides = array<i32>} : memref<16x32xf32, #tpu.memory_space<vmem>>, vector<1x32xf32>,
    %c2 = arith.constant 2 : index
    %8 = memref.load %arg0[%c2] : memref<16xi32, #tpu.memory_space<smem>>
    %9 = arith.index_cast %8 : i32 to index
    %c0_6 = arith.constant 0 : index
    %10 = vector.load %arg1[%9, %c0_6] : memref<64x32xf32, #tpu.memory_space<vmem>>, vector<1x32xf32>
    %c2_7 = arith.constant 2 : index
    %c0_8 = arith.constant 0 : index
    %11 = vector.load %arg4[%c2_7, %c0_8] : memref<16x32xf32, #tpu.memory_space<vmem>>, vector<1x32xf32>
    tpu.vector_store %arg4[%c2_7, %c0_8], %10 {strides = array<i32>} : memref<16x32xf32, #tpu.memory_space<vmem>>, vector<1x32xf32>,
    %c3 = arith.constant 3 : index
    %12 = memref.load %arg0[%c3] : memref<16xi32, #tpu.memory_space<smem>>
    %13 = arith.index_cast %12 : i32 to index
    %c0_9 = arith.constant 0 : index
    %14 = vector.load %arg1[%13, %c0_9] : memref<64x32xf32, #tpu.memory_space<vmem>>, vector<1x32xf32>
    %c3_10 = arith.constant 3 : index
    %c0_11 = arith.constant 0 : index
    %15 = vector.load %arg4[%c3_10, %c0_11] : memref<16x32xf32, #tpu.memory_space<vmem>>, vector<1x32xf32>
    tpu.vector_store %arg4[%c3_10, %c0_11], %14 {strides = array<i32>} : memref<16x32xf32, #tpu.memory_space<vmem>>, vector<1x32xf32>,
    %c4 = arith.constant 4 : index
    %16 = memref.load %arg0[%c4] : memref<16xi32, #tpu.memory_space<smem>>
    %17 = arith.index_cast %16 : i32 to index
    %c0_12 = arith.constant 0 : index
    %18 = vector.load %arg1[%17, %c0_12] : memref<64x32xf32, #tpu.memory_space<vmem>>, vector<1x32xf32>
    %c4_13 = arith.constant 4 : index
    %c0_14 = arith.constant 0 : index
    %19 = vector.load %arg4[%c4_13, %c0_14] : memref<16x32xf32, #tpu.memory_space<vmem>>, vector<1x32xf32>
    tpu.vector_store %arg4[%c4_13, %c0_14], %18 {strides = array<i32>} : memref<16x32xf32, #tpu.memory_space<vmem>>, vector<1x32xf32>,
    %c5 = arith.constant 5 : index
    %20 = memref.load %arg0[%c5] : memref<16xi32, #tpu.memory_space<smem>>
    %21 = arith.index_cast %20 : i32 to index
    %c0_15 = arith.constant 0 : index
    %22 = vector.load %arg1[%21, %c0_15] : memref<64x32xf32, #tpu.memory_space<vmem>>, vector<1x32xf32>
    %c5_16 = arith.constant 5 : index
    %c0_17 = arith.constant 0 : index
    %23 = vector.load %arg4[%c5_16, %c0_17] : memref<16x32xf32, #tpu.memory_space<vmem>>, vector<1x32xf32>
    tpu.vector_store %arg4[%c5_16, %c0_17], %22 {strides = array<i32>} : memref<16x32xf32, #tpu.memory_space<vmem>>, vector<1x32xf32>,
    %c6 = arith.constant 6 : index
    %24 = memref.load %arg0[%c6] : memref<16xi32, #tpu.memory_space<smem>>
    %25 = arith.index_cast %24 : i32 to index
    %c0_18 = arith.constant 0 : index
    %26 = vector.load %arg1[%25, %c0_18] : memref<64x32xf32, #tpu.memory_space<vmem>>, vector<1x32xf32>
    %c6_19 = arith.constant 6 : index
    %c0_20 = arith.constant 0 : index
    %27 = vector.load %arg4[%c6_19, %c0_20] : memref<16x32xf32, #tpu.memory_space<vmem>>, vector<1x32xf32>
    tpu.vector_store %arg4[%c6_19, %c0_20], %26 {strides = array<i32>} : memref<16x32xf32, #tpu.memory_space<vmem>>, vector<1x32xf32>,
    %c7 = arith.constant 7 : index
    %28 = memref.load %arg0[%c7] : memref<16xi32, #tpu.memory_space<smem>>
    %29 = arith.index_cast %28 : i32 to index
    %c0_21 = arith.constant 0 : index
    %30 = vector.load %arg1[%29, %c0_21] : memref<64x32xf32, #tpu.memory_space<vmem>>, vector<1x32xf32>
    %c7_22 = arith.constant 7 : index
    %c0_23 = arith.constant 0 : index
    %31 = vector.load %arg4[%c7_22, %c0_23] : memref<16x32xf32, #tpu.memory_space<vmem>>, vector<1x32xf32>
    tpu.vector_store %arg4[%c7_22, %c0_23], %30 {strides = array<i32>} : memref<16x32xf32, #tpu.memory_space<vmem>>, vector<1x32xf32>,
    %c8 = arith.constant 8 : index
    %32 = memref.load %arg0[%c8] : memref<16xi32, #tpu.memory_space<smem>>
    %33 = arith.index_cast %32 : i32 to index
    %c0_24 = arith.constant 0 : index
    %34 = vector.load %arg1[%33, %c0_24] : memref<64x32xf32, #tpu.memory_space<vmem>>, vector<1x32xf32>
    %c8_25 = arith.constant 8 : index
    %c0_26 = arith.constant 0 : index
    %35 = vector.load %arg4[%c8_25, %c0_26] : memref<16x32xf32, #tpu.memory_space<vmem>>, vector<1x32xf32>
    tpu.vector_store %arg4[%c8_25, %c0_26], %34 {strides = array<i32>} : memref<16x32xf32, #tpu.memory_space<vmem>>, vector<1x32xf32>,
    %c9 = arith.constant 9 : index
    %36 = memref.load %arg0[%c9] : memref<16xi32, #tpu.memory_space<smem>>
    %37 = arith.index_cast %36 : i32 to index
    %c0_27 = arith.constant 0 : index
    %38 = vector.load %arg1[%37, %c0_27] : memref<64x32xf32, #tpu.memory_space<vmem>>, vector<1x32xf32>
    %c9_28 = arith.constant 9 : index
    %c0_29 = arith.constant 0 : index
    %39 = vector.load %arg4[%c9_28, %c0_29] : memref<16x32xf32, #tpu.memory_space<vmem>>, vector<1x32xf32>
    tpu.vector_store %arg4[%c9_28, %c0_29], %38 {strides = array<i32>} : memref<16x32xf32, #tpu.memory_space<vmem>>, vector<1x32xf32>,
    %c10 = arith.constant 10 : index
    %40 = memref.load %arg0[%c10] : memref<16xi32, #tpu.memory_space<smem>>
    %41 = arith.index_cast %40 : i32 to index
    %c0_30 = arith.constant 0 : index
    %42 = vector.load %arg1[%41, %c0_30] : memref<64x32xf32, #tpu.memory_space<vmem>>, vector<1x32xf32>
    %c10_31 = arith.constant 10 : index
    %c0_32 = arith.constant 0 : index
    %43 = vector.load %arg4[%c10_31, %c0_32] : memref<16x32xf32, #tpu.memory_space<vmem>>, vector<1x32xf32>
    tpu.vector_store %arg4[%c10_31, %c0_32], %42 {strides = array<i32>} : memref<16x32xf32, #tpu.memory_space<vmem>>, vector<1x32xf32>,
    %c11 = arith.constant 11 : index
    %44 = memref.load %arg0[%c11] : memref<16xi32, #tpu.memory_space<smem>>
    %45 = arith.index_cast %44 : i32 to index
    %c0_33 = arith.constant 0 : index
    %46 = vector.load %arg1[%45, %c0_33] : memref<64x32xf32, #tpu.memory_space<vmem>>, vector<1x32xf32>
    %c11_34 = arith.constant 11 : index
    %c0_35 = arith.constant 0 : index
    %47 = vector.load %arg4[%c11_34, %c0_35] : memref<16x32xf32, #tpu.memory_space<vmem>>, vector<1x32xf32>
    tpu.vector_store %arg4[%c11_34, %c0_35], %46 {strides = array<i32>} : memref<16x32xf32, #tpu.memory_space<vmem>>, vector<1x32xf32>,
    %c12 = arith.constant 12 : index
    %48 = memref.load %arg0[%c12] : memref<16xi32, #tpu.memory_space<smem>>
    %49 = arith.index_cast %48 : i32 to index
    %c0_36 = arith.constant 0 : index
    %50 = vector.load %arg1[%49, %c0_36] : memref<64x32xf32, #tpu.memory_space<vmem>>, vector<1x32xf32>
    %c12_37 = arith.constant 12 : index
    %c0_38 = arith.constant 0 : index
    %51 = vector.load %arg4[%c12_37, %c0_38] : memref<16x32xf32, #tpu.memory_space<vmem>>, vector<1x32xf32>
    tpu.vector_store %arg4[%c12_37, %c0_38], %50 {strides = array<i32>} : memref<16x32xf32, #tpu.memory_space<vmem>>, vector<1x32xf32>,
    %c13 = arith.constant 13 : index
    %52 = memref.load %arg0[%c13] : memref<16xi32, #tpu.memory_space<smem>>
    %53 = arith.index_cast %52 : i32 to index
    %c0_39 = arith.constant 0 : index
    %54 = vector.load %arg1[%53, %c0_39] : memref<64x32xf32, #tpu.memory_space<vmem>>, vector<1x32xf32>
    %c13_40 = arith.constant 13 : index
    %c0_41 = arith.constant 0 : index
    %55 = vector.load %arg4[%c13_40, %c0_41] : memref<16x32xf32, #tpu.memory_space<vmem>>, vector<1x32xf32>
    tpu.vector_store %arg4[%c13_40, %c0_41], %54 {strides = array<i32>} : memref<16x32xf32, #tpu.memory_space<vmem>>, vector<1x32xf32>,
    %c14 = arith.constant 14 : index
    %56 = memref.load %arg0[%c14] : memref<16xi32, #tpu.memory_space<smem>>
    %57 = arith.index_cast %56 : i32 to index
    %c0_42 = arith.constant 0 : index
    %58 = vector.load %arg1[%57, %c0_42] : memref<64x32xf32, #tpu.memory_space<vmem>>, vector<1x32xf32>
    %c14_43 = arith.constant 14 : index
    %c0_44 = arith.constant 0 : index
    %59 = vector.load %arg4[%c14_43, %c0_44] : memref<16x32xf32, #tpu.memory_space<vmem>>, vector<1x32xf32>
    tpu.vector_store %arg4[%c14_43, %c0_44], %58 {strides = array<i32>} : memref<16x32xf32, #tpu.memory_space<vmem>>, vector<1x32xf32>,
    %c15 = arith.constant 15 : index
    %60 = memref.load %arg0[%c15] : memref<16xi32, #tpu.memory_space<smem>>
    %61 = arith.index_cast %60 : i32 to index
    %c0_45 = arith.constant 0 : index
    %62 = vector.load %arg1[%61, %c0_45] : memref<64x32xf32, #tpu.memory_space<vmem>>, vector<1x32xf32>
    %c15_46 = arith.constant 15 : index
    %c0_47 = arith.constant 0 : index
    %63 = vector.load %arg4[%c15_46, %c0_47] : memref<16x32xf32, #tpu.memory_space<vmem>>, vector<1x32xf32>
    tpu.vector_store %arg4[%c15_46, %c0_47], %62 {strides = array<i32>} : memref<16x32xf32, #tpu.memory_space<vmem>>, vector<1x32xf32>,
    %64 = tpu.concatenate %2, %34 in 0 : vector<1x32xf32>, vector<1x32xf32> -> vector<2x32xf32>
    %c0_48 = arith.constant 0 : index
    %c0_49 = arith.constant 0 : index
    %65 = vector.load %arg2[%c0_48, %c0_49] : memref<32x32xf32, #tpu.memory_space<vmem>>, vector<32x32xf32>
    %cst = arith.constant dense<0.000000e+00> : vector<2x32xf32>
    %66 = tpu.matmul %64, %65, %cst {dimension_numbers = #tpu.dot_dimension_numbers<[1], [0], [0], [1], [0, 0, 1, 1], [], []>} : vector<2x32xf32>, vector<32x32xf32>, vector<2x32xf32> -> vector<2x32xf32>
    %c0_50 = arith.constant 0 : index
    %c0_51 = arith.constant 0 : index
    %67 = vector.load %arg3[%c0_50, %c0_51] : memref<1x32xf32, #tpu.memory_space<vmem>>, vector<1x32xf32>
    %68 = vector.broadcast %67 : vector<1x32xf32> to vector<2x32xf32>
    %69 = arith.addf %66, %68 : vector<2x32xf32>
    %c0_52 = arith.constant 0 : index
    %c0_53 = arith.constant 0 : index
    %70 = vector.load %arg5[%c0_52, %c0_53] : memref<2x32xf32, #tpu.memory_space<vmem>>, vector<2x32xf32>
    tpu.vector_store %arg5[%c0_52, %c0_53], %69 {strides = array<i32>} : memref<2x32xf32, #tpu.memory_space<vmem>>, vector<2x32xf32>,
    return
  }
}

</mosaic_0001>

<bundles_post_ra>
// kernel: tpu_custom_call.1
= control target key start
LH: loop header
LB: loop body
LE: loop exit
PB: predicated region body
PF: predicated region fallthrough
CT: control target
= control target key end

     0   :  { %11 = vsyncpa [#allocation4], 0  ;;  %s503_s0 = inlined_call_operand.vmem [shape: s32[16], index: 0, kind: input, shape index: {}]   ;;  %s504_s1 = inlined_call_operand.vmem [shape: f32[64,32], index: 1, kind: input, shape index: {}]   ;;  %s505_s2 = inlined_call_operand.vmem [shape: f32[32,32], index: 2, kind: input, shape index: {}]   ;;  %s506_s3 = inlined_call_operand.vmem [shape: f32[1,32], index: 3, kind: input, shape index: {}]   ;;  %s507_s4 = inlined_call_operand.hbm [shape: f32[16,32], index: 4, kind: output, shape index: {0}]   ;;  %s508_s5 = inlined_call_operand.hbm [shape: f32[2,32], index: 5, kind: output, shape index: {1}]  }
   0x1   :  { %12 = vsyncpa [#allocation3], 0 }
   0x2   :  { %13 = vsyncpa [#allocation7], 0  ;;  %s20_s20 = sshll.u32 %s503_s0, 4  ;;  %s21_s20 = int_to_ptr.vmem [resolvable:$true] %s20_s20 }
   0x3   :  { %s285_s21 = scalar_lea.vmem %s21_s20, 16  ;;  %p290_p1 = scmp.lt.s32.totalorder %s21_s20, %s21_s20 }
   0x4   :  { %p286_p0 = scmp.ne.s32.totalorder %s21_s20, %s285_s21  ;;  %p291_p2 = scmp.lt.s32.totalorder %s285_s21, %s285_s21 }
   0x6   :  { %p292_p3 = por %p291_p2, %p290_p1 }
   0x8   :  { %p293_p4 = pnand %p292_p3, %p286_p0 }
   0xa   :  { %296 = shalt.err (!%p293_p4)
}
   0xb   :  { %s347_s22 = smov [#allocation2]  }
   0xc   :  { %23 = dma.vmem_to_smem %s21_s20, 16, %s347_s22, [#allocation4]  }
   0xd   :  { %341 = dma.done.wait [#allocation4], 16  }
   0xe   :  { %342 = vsyncadd [#allocation4], 4294967280 }
   0xf   :  { %33 = sfence }
  0x10   :  { %v104_v0 = vld [vmem:[%s505_s2] sm:$0xff]  ;;  %v105_v1 = vld [vmem:[%s505_s2 + $0x8] sm:$0xff]  ;;  %v106_v2 = vld [vmem:[%s505_s2 + $0x10] sm:$0xff]  ;;  %v348_v3 = vmov 0.0|0.0   ;;  %vm349_vm0 = vmmov 0   ;;  %v350_v6 = vmov 0.0  }
  0x11   :  { %271 = vmatprep.subr.bf16.mxu0 %v348_v3  ;;  %v272_v4 = vpack.c.bf16 %v105_v1, %v104_v0  ;;  %v107_v5 = vld [vmem:[%s505_s2 + $0x18] sm:$0xff]  ;;  %268 = vmatprep.mubr.msk.f32.mxu0 %vm349_vm0, %v350_v6  ;;  %s34_s30 = sld [smem:[#allocation2]]  ;;  %vm37_vm1 = vcmask 253952   ;;  %vm102_vm2 = vcmask 1040384   ;;  %vm115_vm3 = vcmask 261120   ;;  %s238_s2 = sld [smem:[#allocation2 + $0x1]] }
  0x12   :  { %s245_s6 = sld [smem:[#allocation2 + $0x8]]  ;;  %v275_v7 = vpack.c.bf16 %v107_v5, %v106_v2  ;;  %s239_s13 = sld [smem:[#allocation2 + $0x2]] }
  0x13   :  { %273 = vmatpush3.bf16.msra.mxu0 %v272_v4  ;;  %s240_s14 = sld [smem:[#allocation2 + $0x3]]  ;;  %s241_s15 = sld [smem:[#allocation2 + $0x4]] }
  0x14   :  { %274 = vmatprep.subr.bf16.mxu0 %v348_v3  ;;  %s242_s16 = sld [smem:[#allocation2 + $0x5]]  ;;  %s243_s17 = sld [smem:[#allocation2 + $0x6]] }
  0x15   :  { %s244_s18 = sld [smem:[#allocation2 + $0x7]]  ;;  %s246_s19 = sld [smem:[#allocation2 + $0x9]] }
  0x16   :  { %s408_s20 = sld [smem:[#allocation2 + $0xa]]  ;;  %s410_s21 = sld [smem:[#allocation2 + $0xb]] }
  0x17   :  { %276 = vmatpush3.bf16.msra.mxu0 %v275_v7  ;;  %s35_s9 = scalar_lea.vmem %s504_s1, %s34_s30  ;;  %s412_s22 = sld [smem:[#allocation2 + $0xc]] }
  0x18   :  { %s68_s12 = scalar_lea.vmem %s504_s1, %s245_s6  ;;  %v36_v8 = vld [vmem:[%s35_s9] sm:$0x1]  ;;  %s414_s23 = sld [smem:[#allocation2 + $0xd]] }
  0x19   :  { %v69_v9 = vld [vmem:[%s68_s12] sm:$0x1]  ;;  %38 = vst.msk [vmem:[#allocation5] sm:$0x1] %vm37_vm1, %v36_v8  ;;  %s40_s26 = scalar_lea.vmem %s504_s1, %s238_s2  ;;  %s44_s28 = scalar_lea.vmem %s504_s1, %s239_s13 }
  0x1a   :  { %70 = vst.msk [vmem:[#allocation5 + $0x8] sm:$0x1] %vm37_vm1, %v69_v9  ;;  %v100_v10 = vrot.slane %v69_v9, 7  ;;  %v41_v12 = vld [vmem:[%s40_s26] sm:$0x1]  ;;  %s48_s6 = scalar_lea.vmem %s504_s1, %s240_s14  ;;  %s52_s9 = scalar_lea.vmem %s504_s1, %s241_s15 }
  0x1b   :  { %v45_v13 = vld [vmem:[%s44_s28] sm:$0x1]  ;;  %42 = vst.msk [vmem:[#allocation5 + $0x1] sm:$0x1] %vm37_vm1, %v41_v12  ;;  %s56_s12 = scalar_lea.vmem %s504_s1, %s242_s16  ;;  %s60_s14 = scalar_lea.vmem %s504_s1, %s243_s17 }
  0x1c   :  { %v103_v11 = vsel %vm102_vm2, %v36_v8, %v100_v10  ;;  %46 = vst.msk [vmem:[#allocation5 + $0x2] sm:$0x1] %vm37_vm1, %v45_v13  ;;  %v49_v14 = vld [vmem:[%s48_s6] sm:$0x1]  ;;  %s64_s25 = scalar_lea.vmem %s504_s1, %s244_s18  ;;  %s72_s16 = scalar_lea.vmem %s504_s1, %s246_s19 }
  0x1d   :  { %269 = vmatmul.mubr.msk.f32.vlgmr.msra.gmra.mrb[0].mxu0 %vm115_vm3, %v103_v11  ;;  %v53_v15 = vld [vmem:[%s52_s9] sm:$0x1]  ;;  %50 = vst.msk [vmem:[#allocation5 + $0x3] sm:$0x1] %vm37_vm1, %v49_v14  ;;  %s76_s28 = scalar_lea.vmem %s504_s1, %s408_s20  ;;  %s80_s6 = scalar_lea.vmem %s504_s1, %s410_s21 }
  0x1e   :  { %54 = vst.msk [vmem:[#allocation5 + $0x4] sm:$0x1] %vm37_vm1, %v53_v15  ;;  %v57_v16 = vld [vmem:[%s56_s12] sm:$0x1]  ;;  %s84_s7 = scalar_lea.vmem %s504_s1, %s412_s22  ;;  %s88_s10 = scalar_lea.vmem %s504_s1, %s414_s23 }
  0x1f   :  { %v61_v17 = vld [vmem:[%s60_s14] sm:$0x1]  ;;  %58 = vst.msk [vmem:[#allocation5 + $0x5] sm:$0x1] %vm37_vm1, %v57_v16  ;;  %s251_s20 = sld [smem:[#allocation2 + $0xe]]  ;;  %s252_s21 = sld [smem:[#allocation2 + $0xf]] }
  0x20   :  { %62 = vst.msk [vmem:[#allocation5 + $0x6] sm:$0x1] %vm37_vm1, %v61_v17  ;;  %v65_v18 = vld [vmem:[%s64_s25] sm:$0x1]  ;;  %s351_s11 = smov [#allocation5]  }
  0x21   :  { %v73_v19 = vld [vmem:[%s72_s16] sm:$0x1]  ;;  %66 = vst.msk [vmem:[#allocation5 + $0x7] sm:$0x1] %vm37_vm1, %v65_v18  ;;  %s196_s12 = sshll.u32 %s351_s11, 4  ;;  %s197_s12 = int_to_ptr.vmem [resolvable:$true] %s196_s12 }
  0x22   :  { %74 = vst.msk [vmem:[#allocation5 + $0x9] sm:$0x1] %vm37_vm1, %v73_v19  ;;  %v77_v20 = vld [vmem:[%s76_s28] sm:$0x1]  ;;  %s297_s24 = scalar_lea.vmem %s197_s12, 256  ;;  %p302_p6 = scmp.lt.s32.totalorder %s197_s12, %s197_s12 }
  0x23   :  { %v81_v21 = vld [vmem:[%s80_s6] sm:$0x1]  ;;  %78 = vst.msk [vmem:[#allocation5 + $0xa] sm:$0x1] %vm37_vm1, %v77_v20  ;;  %p298_p5 = scmp.ne.s32.totalorder %s197_s12, %s297_s24  ;;  %p303_p7 = scmp.lt.s32.totalorder %s297_s24, %s297_s24 }
  0x24   :  { %82 = vst.msk [vmem:[#allocation5 + $0xb] sm:$0x1] %vm37_vm1, %v81_v21  ;;  %v85_v22 = vld [vmem:[%s84_s7] sm:$0x1] }
  0x25   :  { %v89_v23 = vld [vmem:[%s88_s10] sm:$0x1]  ;;  %86 = vst.msk [vmem:[#allocation5 + $0xc] sm:$0x1] %vm37_vm1, %v85_v22  ;;  %s92_s13 = scalar_lea.vmem %s504_s1, %s251_s20  ;;  %s96_s15 = scalar_lea.vmem %s504_s1, %s252_s21 }
  0x26   :  { %90 = vst.msk [vmem:[#allocation5 + $0xd] sm:$0x1] %vm37_vm1, %v89_v23  ;;  %v93_v24 = vld [vmem:[%s92_s13] sm:$0x1]  ;;  %p304_p8 = por %p303_p7, %p302_p6 }
  0x27   :  { %94 = vst.msk [vmem:[#allocation5 + $0xe] sm:$0x1] %vm37_vm1, %v93_v24  ;;  %v97_v25 = vld [vmem:[%s96_s15] sm:$0x1] }
  0x28   :  { %98 = vst.msk [vmem:[#allocation5 + $0xf] sm:$0x1] %vm37_vm1, %v97_v25  ;;  %p305_p9 = pnand %p304_p8, %p298_p5 }
  0x2a   :  { %308 = shalt.err (!%p305_p9)
}
  0x2b   :  { %s309_s0 = scalar_lea.hbm %s507_s4, 256 }
  0x2c   :  { %p310_p10 = scmp.ne.s32.totalorder %s507_s4, %s309_s0  ;;  %p313_p11 = scmp.lt.u32.totalorder %s309_s0, %s507_s4 }
  0x2e   :  { %p315_p12 = pnand %p313_p11, %p310_p10 }
  0x30   :  { %318 = shalt.err (!%p315_p12)
}
  0x31   :  { %s352_s28 = smov 128   ;;  %s353_s29 = smov 8   ;;  %v253_v26 = vld [vmem:[%s506_s3] ss:$0 sm:$0xff]  ;;  %vm189_vm4 = vcmask 254976  }
  0x32   :  { %202 = dma.vmem_to_hbm [thread:$0]  %s197_s12, 256, %s507_s4, [#allocation3], %s352_s28, %s352_s28, %s353_s29  }
  0x33   :  { %s354_s7 = smov [#allocation6]  }
  0x34   :  { %s209_s8 = sshll.u32 %s354_s7, 4  ;;  %s210_s8 = int_to_ptr.vmem [resolvable:$true] %s209_s8 }
  0x35   :  { %s319_s9 = scalar_lea.vmem %s210_s8, 32  ;;  %p324_p0 = scmp.lt.s32.totalorder %s210_s8, %s210_s8 }
  0x36   :  { %p320_p13 = scmp.ne.s32.totalorder %s210_s8, %s319_s9  ;;  %p325_p1 = scmp.lt.s32.totalorder %s319_s9, %s319_s9 }
  0x38   :  { %p326_p2 = por %p325_p1, %p324_p0 }
  0x3a   :  { %p327_p3 = pnand %p326_p2, %p320_p13 }
  0xf0   :  { %v185_v27 = vpop.f32.mrb[0].mxu0 }
  0xf1   :  { %v186_v28 = vadd.f32 %v253_v26, %v185_v27  ;;  %v270_v29 = vpop.f32.mrb[1].mxu0 }
  0xf3   :  { %190 = vst.msk [vmem:[#allocation6] sm:$0x3] %vm189_vm4, %v186_v28 }
  0xf4   :  { %330 = shalt.err (!%p327_p3)
}
  0xf5   :  { %s331_s20 = scalar_lea.hbm %s508_s5, 32 }
  0xf6   :  { %p332_p4 = scmp.ne.s32.totalorder %s508_s5, %s331_s20  ;;  %p335_p5 = scmp.lt.u32.totalorder %s331_s20, %s508_s5 }
  0xf8   :  { %p337_p6 = pnand %p335_p5, %p332_p4 }
  0xfa   :  { %340 = shalt.err (!%p337_p6)
}
  0xfb   :  { %212 = dma.vmem_to_hbm [thread:$0]  %s210_s8, 32, %s508_s5, [#allocation7]  }
  0xfc   :  { %343 = dma.done.wait [#allocation3], 256  }
  0xfd   :  { %344 = vsyncadd [#allocation3], 4294967040 }
  0xfe   :  { %345 = dma.done.wait [#allocation7], 32  }
  0xff   :  { %346 = vsyncadd [#allocation7], 4294967264 }
 0x100   :  { %219 = vsyncpa [#allocation3], 1 }
 0x101   :  { %220 = vsyncpa [#allocation7], 1 }
 0x102   :  { %221 = vsyncpa [#allocation4], 1 }

</bundles_post_ra>
